<compile_context>
chip_gen: v5e
topology: v5e:2x2
jax: 0.10.0
libtpu: 0.0.40
codegen_flags: <defaults>
</compile_context>

<pallas_src>
from functools import partial

import jax
import jax.numpy as jnp
import numpy as np
from jax.experimental import pallas as pl
from jax.experimental.pallas import tpu as pltpu


def _round_up(x, m):
    return ((x + m - 1) // m) * m


def _chip_info():
    """Best-effort (per-TensorCore VMEM capacity, TensorCores per chip)."""
    vmem_cap = 64 * 1024 * 1024          # conservative fallback (v7x per-TC VMEM)
    num_tc = 1
    try:
        vmem_cap = int(pltpu.get_tpu_info().vmem_capacity_bytes)
    except Exception:
        pass
    try:
        kind = jax.devices()[0].device_kind.lower()
        if "v7" in kind:
            num_tc = 2                    # v7x: two TensorCores per chip
    except Exception:
        pass
    return vmem_cap, num_tc


def _disc_kernel(x_ref, w1_ref, w2_ref, w3_ref, b3_ref, w4_ref, b4_ref, out_ref,
                 *, compute_dtype):
    # x stays f32 for the elementwise gate; matmul operands are cast inline to the
    # (bf16-native) MXU dtype, accumulation is always f32.
    x_f32 = x_ref[...]

    # --- AttentionBlock (AdaptiveAvgPool1d(1) is the identity for 2-D (B, C) input) ---
    h = jnp.maximum(
        jnp.dot(x_f32.astype(compute_dtype), w1_ref[...],
                preferred_element_type=jnp.float32), 0.0)                # (tb, hid_p)
    s = jnp.dot(h.astype(compute_dtype), w2_ref[...],
                preferred_element_type=jnp.float32)                      # (tb, C_p)
    # sigmoid(s) == 0.5 * tanh(0.5 * s) + 0.5  -> single EUP op, no exp + divide.
    y = 0.5 * jnp.tanh(0.5 * s) + 0.5
    x_att = x_f32 * y                                                    # f32 gate

    # --- Head: Linear(C, 128) -> ReLU -> Linear(128, nd_p) ---
    z = jnp.maximum(
        jnp.dot(x_att.astype(compute_dtype), w3_ref[...],
                preferred_element_type=jnp.float32) + b3_ref[...], 0.0)  # (tb, head_p)
    out = jnp.dot(z.astype(compute_dtype), w4_ref[...],
                  preferred_element_type=jnp.float32) + b4_ref[...]      # (tb, nd_p)
    out_ref[...] = out.astype(out_ref.dtype)


def domain_discriminator_v4(x, params, *, tb=None, compute_dtype=jnp.bfloat16,
                            out_dtype=jnp.float32, weight_buffer_count=1,
                            vmem_limit_bytes=None):
    """x: (B, C) float32; params: dict of pre-transposed weights / biases."""
    B, C = x.shape
    w1_t, w2_t = params["w1_t"], params["w2_t"]
    w3_t, b3 = params["w3_t"], params["b3"]
    w4_t, b4 = params["w4_t"], params["b4"]
    hid = w1_t.shape[1]
    head = w3_t.shape[1]          # 128
    nd = w4_t.shape[1]

    # --- pad every lane-mapped dim to a multiple of 128 (full-width MXU pushes,
    #     unmasked lane-dense stores).  Zero padding is exact through the network. ---
    C_p = _round_up(max(C, 128), 128)
    hid_p = _round_up(max(hid, 128), 128)
    head_p = _round_up(max(head, 128), 128)
    nd_p = _round_up(max(nd, 128), 128)

    cdt = jnp.dtype(compute_dtype)
    gran = 16 if cdt.itemsize < 4 else 8      # bf16 packs 2 rows per sublane

    vmem_cap, num_tc = _chip_info()
    # Leave headroom below physical VMEM for compiler scratch / spills.
    vmem_budget = min((vmem_cap * 3) // 4, 96 * 1024 * 1024)
    if vmem_limit_bytes is None:
        vmem_limit_bytes = vmem_budget

    wbuf = weight_buffer_count if weight_buffer_count is not None else 2
    weight_bytes = ((C_p * hid_p + hid_p * C_p + C_p * head_p + head_p * nd_p)
                    * cdt.itemsize + (head_p + nd_p) * 4) * wbuf
    # Per-batch-row VMEM: double-buffered x/out tiles + f32 and bf16 intermediates.
    per_row_bytes = (4 * (4 * C_p + hid_p + head_p + 2 * nd_p)
                     + cdt.itemsize * (2 * C_p + hid_p + head_p))

    # --- batch tile selection (VMEM-aware, chip-aware) ---
    if tb is None:
        avail = max(vmem_budget - weight_bytes - (1 << 20), per_row_bytes * gran)
        tb_fit = max(gran, (avail // per_row_bytes) // gran * gran)
        if num_tc <= 1:
            # Single TensorCore (v5e/v6e): no benefit from splitting -- one grid
            # step if it fits in VMEM, otherwise the biggest legal tile.
            tb = min(tb_fit, _round_up(B, gran), 2048)
        else:
            # Two TensorCores (v7x): aim for >= 2 grid steps so ("parallel",)
            # shards the grid across both cores.
            tb = min(tb_fit, _round_up(pl.cdiv(B, 2), gran), 1024)
    tb = max(gran, _round_up(int(tb), gran))

    steps = pl.cdiv(B, tb)
    if num_tc > 1 and steps > 1 and steps % 2 == 1:
        steps += 1                              # balance the two TensorCores evenly
    B_pad = steps * tb

    # --- padding (zero rows/cols are exact; padded batch rows are sliced off) ---
    x_p = x
    if B_pad != B or C_p != C:
        x_p = jnp.pad(x, ((0, B_pad - B), (0, C_p - C)))
    w1_p = jnp.pad(w1_t, ((0, C_p - C), (0, hid_p - hid))).astype(compute_dtype)
    w2_p = jnp.pad(w2_t, ((0, hid_p - hid), (0, C_p - C))).astype(compute_dtype)
    w3_p = jnp.pad(w3_t, ((0, C_p - C), (0, head_p - head))).astype(compute_dtype)
    w4_p = jnp.pad(w4_t, ((0, head_p - head), (0, nd_p - nd))).astype(compute_dtype)
    b3_p = jnp.pad(b3, ((0, 0), (0, head_p - head))).astype(jnp.float32)
    b4_p = jnp.pad(b4, ((0, 0), (0, nd_p - nd))).astype(jnp.float32)

    grid = (steps,)

    def w_spec(shape):
        # Weights/biases have constant index maps -> fetched once and resident.
        # Single-buffering them (default) frees a full weight footprint of VMEM.
        kw = {}
        if weight_buffer_count is not None:
            kw["pipeline_mode"] = pl.Buffered(weight_buffer_count)
        return pl.BlockSpec(shape, lambda i: (0, 0), **kw)

    flops = 2 * B_pad * (C_p * hid_p + hid_p * C_p + C_p * head_p + head_p * nd_p)
    bytes_accessed = (
        x_p.size * x_p.dtype.itemsize
        + sum(int(a.size) * a.dtype.itemsize
              for a in (w1_p, w2_p, w3_p, b3_p, w4_p, b4_p))
        + B_pad * nd_p * jnp.dtype(out_dtype).itemsize)
    cost = pl.CostEstimate(flops=int(flops),
                           transcendentals=int(B_pad * C_p),   # tanh in the gate
                           bytes_accessed=int(bytes_accessed))

    out = pl.pallas_call(
        partial(_disc_kernel, compute_dtype=compute_dtype),
        out_shape=jax.ShapeDtypeStruct((B_pad, nd_p), out_dtype),
        grid_spec=pltpu.PrefetchScalarGridSpec(
            num_scalar_prefetch=0,
            grid=grid,
            in_specs=[
                pl.BlockSpec((tb, C_p), lambda i: (i, 0)),   # x tile (streamed)
                w_spec((C_p, hid_p)),                        # W1^T
                w_spec((hid_p, C_p)),                        # W2^T
                w_spec((C_p, head_p)),                       # W3^T
                w_spec((1, head_p)),                         # b3
                w_spec((head_p, nd_p)),                      # W4^T (lane-padded)
                w_spec((1, nd_p)),                           # b4  (lane-padded)
            ],
            out_specs=pl.BlockSpec((tb, nd_p), lambda i: (i, 0)),
        ),
        compiler_params=pltpu.CompilerParams(
            dimension_semantics=("parallel",),
            vmem_limit_bytes=int(vmem_limit_bytes),
        ),
        cost_estimate=cost,
    )(x_p, w1_p, w2_p, w3_p, b3_p, w4_p, b4_p)

    # Drop batch padding and the lane padding of num_domains.
    if B_pad != B or nd_p != nd:
        out = out[:B, :nd]
    return out


def init_params(key, input_dim, num_domains):
    """Deterministic synthetic init mimicking the module's parameter shapes."""
    hid = input_dim // 16
    ks = jax.random.split(key, 6)

    def u(k, shape, fan_in):
        bound = 1.0 / np.sqrt(fan_in)
        return jax.random.uniform(k, shape, jnp.float32, -bound, bound)

    # PyTorch shapes: W1 (hid, C), W2 (C, hid), W3 (128, C), W4 (nd, 128)
    w1 = u(ks[0], (hid, input_dim), input_dim)
    w2 = u(ks[1], (input_dim, hid), hid)
    w3 = u(ks[2], (128, input_dim), input_dim)
    b3 = u(ks[3], (128,), input_dim)
    w4 = u(ks[4], (num_domains, 128), 128)
    b4 = u(ks[5], (num_domains,), 128)

    return {
        "w1_t": w1.T,                      # (C, hid)
        "w2_t": w2.T,                      # (hid, C)
        "w3_t": w3.T,                      # (C, 128)
        "b3": b3.reshape(1, 128),          # (1, 128)
        "w4_t": w4.T,                      # (128, nd)
        "b4": b4.reshape(1, num_domains),  # (1, nd)
    }


def reference(x, p):
    hp = jax.lax.Precision.HIGHEST
    h = jnp.maximum(jnp.dot(x, p["w1_t"], precision=hp), 0.0)
    y = jax.nn.sigmoid(jnp.dot(h, p["w2_t"], precision=hp))
    xa = x * y
    z = jnp.maximum(jnp.dot(xa, p["w3_t"], precision=hp) + p["b3"], 0.0)
    return jnp.dot(z, p["w4_t"], precision=hp) + p["b4"]


if __name__ == "__main__":
    # Small but non-trivial: B not a multiple of the tile granularity (exercises
    # batch padding), C=64 (exercises C lane-padding), num_domains=3 (exercises
    # output lane-padding), hid=C//16=4 (exercises hid padding).
    B, C, ND = 50, 64, 3
    key = jax.random.PRNGKey(0)
    kx, kp = jax.random.split(key)
    x = jax.random.normal(kx, (B, C), jnp.float32)
    params = init_params(kp, C, ND)
    ref = reference(x, params)

    # Default path: bf16 MXU operands, f32 accumulate + f32 gate.
    out_bf16 = jax.block_until_ready(domain_discriminator_v4(x, params))
    np.testing.assert_allclose(np.asarray(out_bf16), np.asarray(ref),
                               rtol=5e-2, atol=5e-2)

    # f32 MXU path (high-precision check).
    out_f32 = jax.block_until_ready(
        domain_discriminator_v4(x, params, compute_dtype=jnp.float32))
    np.testing.assert_allclose(np.asarray(out_f32), np.asarray(ref),
                               rtol=1e-3, atol=1e-3)

    print("KERNEL_OK")
</pallas_src>

<mosaic_0001>
module attributes {stable_mosaic.version = 11 : i64} {
  func.func @_disc_kernel(%arg0: i32, %arg1: memref<64x128xf32, #tpu.memory_space<vmem>>, %arg2: memref<128x128xbf16, #tpu.memory_space<vmem>>, %arg3: memref<128x128xbf16, #tpu.memory_space<vmem>>, %arg4: memref<128x128xbf16, #tpu.memory_space<vmem>>, %arg5: memref<1x128xf32, #tpu.memory_space<vmem>>, %arg6: memref<128x128xbf16, #tpu.memory_space<vmem>>, %arg7: memref<1x128xf32, #tpu.memory_space<vmem>>, %arg8: memref<64x128xf32, #tpu.memory_space<vmem>>) attributes {dimension_semantics = [#tpu.dimension_semantics<parallel>], iteration_bounds = array<i64: 1>, scalar_prefetch = 0 : i64, scratch_operands = 0 : i64, tpu.core_type = #tpu.core_type<tc>, window_params = [{transform_indices = @transform_0, window_bounds = array<i64: 64, 128>}, {pipeline_mode = #tpu.pipeline_mode<synchronous>, transform_indices = @transform_1, window_bounds = array<i64: 128, 128>}, {pipeline_mode = #tpu.pipeline_mode<synchronous>, transform_indices = @transform_2, window_bounds = array<i64: 128, 128>}, {pipeline_mode = #tpu.pipeline_mode<synchronous>, transform_indices = @transform_3, window_bounds = array<i64: 128, 128>}, {pipeline_mode = #tpu.pipeline_mode<synchronous>, transform_indices = @transform_4, window_bounds = array<i64: 1, 128>}, {pipeline_mode = #tpu.pipeline_mode<synchronous>, transform_indices = @transform_5, window_bounds = array<i64: 128, 128>}, {pipeline_mode = #tpu.pipeline_mode<synchronous>, transform_indices = @transform_6, window_bounds = array<i64: 1, 128>}, {transform_indices = @transform_7, window_bounds = array<i64: 64, 128>}]} {
    %c0 = arith.constant 0 : index
    %c0_0 = arith.constant 0 : index
    %0 = vector.load %arg1[%c0, %c0_0] : memref<64x128xf32, #tpu.memory_space<vmem>>, vector<64x128xf32>
    %1 = arith.truncf %0 : vector<64x128xf32> to vector<64x128xbf16>
    %c0_1 = arith.constant 0 : index
    %c0_2 = arith.constant 0 : index
    %2 = vector.load %arg2[%c0_1, %c0_2] : memref<128x128xbf16, #tpu.memory_space<vmem>>, vector<128x128xbf16>
    %cst = arith.constant dense<0.000000e+00> : vector<64x128xf32>
    %3 = tpu.matmul %1, %2, %cst {dimension_numbers = #tpu.dot_dimension_numbers<[1], [0], [0], [1], [0, 0, 1, 1], [], []>} : vector<64x128xbf16>, vector<128x128xbf16>, vector<64x128xf32> -> vector<64x128xf32>
    %cst_3 = arith.constant 0.000000e+00 : f32
    %4 = vector.broadcast %cst_3 : f32 to vector<64x128xf32>
    %5 = arith.maximumf %3, %4 : vector<64x128xf32>
    %6 = arith.truncf %5 : vector<64x128xf32> to vector<64x128xbf16>
    %c0_4 = arith.constant 0 : index
    %c0_5 = arith.constant 0 : index
    %7 = vector.load %arg3[%c0_4, %c0_5] : memref<128x128xbf16, #tpu.memory_space<vmem>>, vector<128x128xbf16>
    %cst_6 = arith.constant dense<0.000000e+00> : vector<64x128xf32>
    %8 = tpu.matmul %6, %7, %cst_6 {dimension_numbers = #tpu.dot_dimension_numbers<[1], [0], [0], [1], [0, 0, 1, 1], [], []>} : vector<64x128xbf16>, vector<128x128xbf16>, vector<64x128xf32> -> vector<64x128xf32>
    %cst_7 = arith.constant 5.000000e-01 : f32
    %9 = vector.broadcast %cst_7 : f32 to vector<64x128xf32>
    %10 = arith.mulf %9, %8 : vector<64x128xf32>
    %11 = math.tanh %10 : vector<64x128xf32>
    %cst_8 = arith.constant 5.000000e-01 : f32
    %12 = vector.broadcast %cst_8 : f32 to vector<64x128xf32>
    %13 = arith.mulf %12, %11 : vector<64x128xf32>
    %cst_9 = arith.constant 5.000000e-01 : f32
    %14 = vector.broadcast %cst_9 : f32 to vector<64x128xf32>
    %15 = arith.addf %13, %14 : vector<64x128xf32>
    %16 = arith.mulf %0, %15 : vector<64x128xf32>
    %17 = arith.truncf %16 : vector<64x128xf32> to vector<64x128xbf16>
    %c0_10 = arith.constant 0 : index
    %c0_11 = arith.constant 0 : index
    %18 = vector.load %arg4[%c0_10, %c0_11] : memref<128x128xbf16, #tpu.memory_space<vmem>>, vector<128x128xbf16>
    %cst_12 = arith.constant dense<0.000000e+00> : vector<64x128xf32>
    %19 = tpu.matmul %17, %18, %cst_12 {dimension_numbers = #tpu.dot_dimension_numbers<[1], [0], [0], [1], [0, 0, 1, 1], [], []>} : vector<64x128xbf16>, vector<128x128xbf16>, vector<64x128xf32> -> vector<64x128xf32>
    %c0_13 = arith.constant 0 : index
    %c0_14 = arith.constant 0 : index
    %20 = vector.load %arg5[%c0_13, %c0_14] : memref<1x128xf32, #tpu.memory_space<vmem>>, vector<1x128xf32>
    %21 = vector.broadcast %20 : vector<1x128xf32> to vector<64x128xf32>
    %22 = arith.addf %19, %21 : vector<64x128xf32>
    %cst_15 = arith.constant 0.000000e+00 : f32
    %23 = vector.broadcast %cst_15 : f32 to vector<64x128xf32>
    %24 = arith.maximumf %22, %23 : vector<64x128xf32>
    %25 = arith.truncf %24 : vector<64x128xf32> to vector<64x128xbf16>
    %c0_16 = arith.constant 0 : index
    %c0_17 = arith.constant 0 : index
    %26 = vector.load %arg6[%c0_16, %c0_17] : memref<128x128xbf16, #tpu.memory_space<vmem>>, vector<128x128xbf16>
    %cst_18 = arith.constant dense<0.000000e+00> : vector<64x128xf32>
    %27 = tpu.matmul %25, %26, %cst_18 {dimension_numbers = #tpu.dot_dimension_numbers<[1], [0], [0], [1], [0, 0, 1, 1], [], []>} : vector<64x128xbf16>, vector<128x128xbf16>, vector<64x128xf32> -> vector<64x128xf32>
    %c0_19 = arith.constant 0 : index
    %c0_20 = arith.constant 0 : index
    %28 = vector.load %arg7[%c0_19, %c0_20] : memref<1x128xf32, #tpu.memory_space<vmem>>, vector<1x128xf32>
    %29 = vector.broadcast %28 : vector<1x128xf32> to vector<64x128xf32>
    %30 = arith.addf %27, %29 : vector<64x128xf32>
    %c0_21 = arith.constant 0 : index
    %c0_22 = arith.constant 0 : index
    %31 = vector.load %arg8[%c0_21, %c0_22] : memref<64x128xf32, #tpu.memory_space<vmem>>, vector<64x128xf32>
    tpu.vector_store %arg8[%c0_21, %c0_22], %30 {strides = array<i32>} : memref<64x128xf32, #tpu.memory_space<vmem>>, vector<64x128xf32>,
    return
  }
  func.func @transform_0(%arg0: i32) -> (i32, i32) {
    %c0_i32 = arith.constant 0 : i32
    %c0_i32_0 = arith.constant 0 : i32
    return %arg0, %c0_i32 : i32, i32
  }
  func.func @transform_1(%arg0: i32) -> (i32, i32) {
    %c0_i32 = arith.constant 0 : i32
    %c0_i32_0 = arith.constant 0 : i32
    %c0_i32_1 = arith.constant 0 : i32
    return %c0_i32, %c0_i32_0 : i32, i32
  }
  func.func @transform_2(%arg0: i32) -> (i32, i32) {
    %c0_i32 = arith.constant 0 : i32
    %c0_i32_0 = arith.constant 0 : i32
    %c0_i32_1 = arith.constant 0 : i32
    return %c0_i32, %c0_i32_0 : i32, i32
  }
  func.func @transform_3(%arg0: i32) -> (i32, i32) {
    %c0_i32 = arith.constant 0 : i32
    %c0_i32_0 = arith.constant 0 : i32
    %c0_i32_1 = arith.constant 0 : i32
    return %c0_i32, %c0_i32_0 : i32, i32
  }
  func.func @transform_4(%arg0: i32) -> (i32, i32) {
    %c0_i32 = arith.constant 0 : i32
    %c0_i32_0 = arith.constant 0 : i32
    %c0_i32_1 = arith.constant 0 : i32
    return %c0_i32, %c0_i32_0 : i32, i32
  }
  func.func @transform_5(%arg0: i32) -> (i32, i32) {
    %c0_i32 = arith.constant 0 : i32
    %c0_i32_0 = arith.constant 0 : i32
    %c0_i32_1 = arith.constant 0 : i32
    return %c0_i32, %c0_i32_0 : i32, i32
  }
  func.func @transform_6(%arg0: i32) -> (i32, i32) {
    %c0_i32 = arith.constant 0 : i32
    %c0_i32_0 = arith.constant 0 : i32
    %c0_i32_1 = arith.constant 0 : i32
    return %c0_i32, %c0_i32_0 : i32, i32
  }
  func.func @transform_7(%arg0: i32) -> (i32, i32) {
    %c0_i32 = arith.constant 0 : i32
    %c0_i32_0 = arith.constant 0 : i32
    return %arg0, %c0_i32 : i32, i32
  }
}

</mosaic_0001>

<bundles_post_ra>
// kernel: tpu_custom_call.1
= control target key start
LH: loop header
LB: loop body
LE: loop exit
PB: predicated region body
PF: predicated region fallthrough
CT: control target
= control target key end

     0   :  { %12 = vsyncpa [#allocation3], 0  ;;  %s1058_s0 = inlined_call_operand.hbm [shape: f32[64,128], index: 0, kind: input, shape index: {}]   ;;  %s1059_s1 = inlined_call_operand.hbm [shape: bf16[128,128], index: 1, kind: input, shape index: {}]   ;;  %s1060_s2 = inlined_call_operand.hbm [shape: bf16[128,128], index: 2, kind: input, shape index: {}]   ;;  %s1061_s3 = inlined_call_operand.hbm [shape: bf16[128,128], index: 3, kind: input, shape index: {}]   ;;  %s1062_s4 = inlined_call_operand.vmem [shape: f32[1,128], index: 4, kind: input, shape index: {}]   ;;  %s1063_s5 = inlined_call_operand.hbm [shape: bf16[128,128], index: 5, kind: input, shape index: {}]   ;;  %s1064_s6 = inlined_call_operand.vmem [shape: f32[1,128], index: 6, kind: input, shape index: {}]   ;;  %s1065_s7 = inlined_call_operand.hbm [shape: f32[64,128], index: 7, kind: output, shape index: {}]  }
   0x1   :  { %13 = vsyncpa [#allocation6], 0 }
   0x2   :  { %14 = vsyncpa [#allocation9], 0  ;;  %s33_s26 = sshll.u32 %s1059_s1, 4  ;;  %s34_s26 = int_to_ptr.hbm [resolvable:$true] %s33_s26 }
   0x3   :  { %15 = vsyncpa [#allocation4], 0  ;;  %s934_s27 = smov [#allocation5]   ;;  %s59_s8 = sshll.u32 %s1061_s3, 4  ;;  %s60_s8 = int_to_ptr.hbm [resolvable:$true] %s59_s8 }
   0x4   :  { %s35_s28 = sshll.u32 %s934_s27, 4  ;;  %s935_s9 = smov 64   ;;  %s36_s28 = int_to_ptr.vmem [resolvable:$true] %s35_s28 }
   0x5   :  { %s936_s10 = smov 4   ;;  %s937_s11 = smov [#allocation8]  }
   0x6   :  { %41 = dma.hbm_to_vmem [thread:$0]  %s34_s26, 1024, %s36_s28, [#allocation6], %s935_s9, %s935_s9, %s936_s10  }
   0x7   :  { %s61_s12 = sshll.u32 %s937_s11, 4  ;;  %s20_s14 = sshll.u32 %s1058_s0, 4  ;;  %s62_s12 = int_to_ptr.vmem [resolvable:$true] %s61_s12  ;;  %s21_s14 = int_to_ptr.hbm [resolvable:$true] %s20_s14 }
   0x8   :  { %67 = dma.hbm_to_vmem [thread:$0]  %s60_s8, 1024, %s62_s12, [#allocation9], %s935_s9, %s935_s9, %s936_s10  }
   0x9   :  { %s938_s3 = smov [#allocation2]   ;;  %s46_s18 = sshll.u32 %s1060_s2, 4  ;;  %s47_s18 = int_to_ptr.hbm [resolvable:$true] %s46_s18 }
   0xa   :  { %s22_s15 = sshll.u32 %s938_s3, 4  ;;  %s939_s19 = smov 128   ;;  %s23_s15 = int_to_ptr.vmem [resolvable:$true] %s22_s15 }
   0xb   :  { %s940_s20 = smov 8   ;;  %s941_s0 = smov [#allocation7]  }
   0xc   :  { %28 = dma.hbm_to_vmem [thread:$0]  %s21_s14, 1024, %s23_s15, [#allocation3], %s939_s19, %s939_s19, %s940_s20  }
   0xd   :  { %s48_s21 = sshll.u32 %s941_s0, 4  ;;  %s74_s24 = sshll.u32 %s1063_s5, 4  ;;  %s49_s21 = int_to_ptr.vmem [resolvable:$true] %s48_s21  ;;  %s75_s24 = int_to_ptr.hbm [resolvable:$true] %s74_s24 }
   0xe   :  { %54 = dma.hbm_to_vmem [thread:$0]  %s47_s18, 1024, %s49_s21, [#allocation6], %s935_s9, %s935_s9, %s936_s10  }
   0xf   :  { %s942_s2 = smov [#allocation10]  }
  0x10   :  { %s76_s25 = sshll.u32 %s942_s2, 4  ;;  %s77_s25 = int_to_ptr.vmem [resolvable:$true] %s76_s25 }
  0x11   :  { %82 = dma.hbm_to_vmem [thread:$0]  %s75_s24, 1024, %s77_s25, [#allocation9], %s935_s9, %s935_s9, %s936_s10  }
  0x12   :  { %926 = dma.done.wait [#allocation3], 1024  }
  0x13   :  { %927 = vsyncadd [#allocation3], 4294966272 }
  0x14   :  { %928 = dma.done.wait [#allocation6], 2048  }
  0x15   :  { %929 = vsyncadd [#allocation6], 4294965248 }
  0x16   :  { %930 = dma.done.wait [#allocation9], 2048  }
  0x17   :  { %931 = vsyncadd [#allocation9], 4294965248  ;;  %v729_v0 = vld [vmem:[#allocation5 + $0x38] sm:$0xff]  ;;  %v728_v1 = vld [vmem:[#allocation5 + $0x30] sm:$0xff]  ;;  %s579_s8 = sshll.u32 %s1065_s7, 4  ;;  %s580_s8 = int_to_ptr.hbm [resolvable:$true] %s579_s8 }
  0x18   :  { %181 = vmatpush.bf16.msra.mxu0 %v729_v0  ;;  %v727_v2 = vld [vmem:[#allocation5 + $0x28] sm:$0xff]  ;;  %v726_v3 = vld [vmem:[#allocation5 + $0x20] sm:$0xff]  ;;  %v725_v4 = vld [vmem:[#allocation5 + $0x18] sm:$0xff] }
  0x19   :  { %v724_v5 = vld [vmem:[#allocation5 + $0x10] sm:$0xff]  ;;  %v723_v6 = vld [vmem:[#allocation5 + $0x8] sm:$0xff]  ;;  %v722_v7 = vld [vmem:[#allocation5] sm:$0xff] }
  0x1a   :  { %v1014_v8 = vld [vmem:[#allocation2] sm:$0xff]  ;;  %v1016_v9 = vld [vmem:[#allocation2 + $0x8] sm:$0xff]  ;;  %v1020_v11 = vld [vmem:[#allocation2 + $0x10] sm:$0xff] }
  0x1b   :  { %v113_v10 = vpack.c.bf16 %v1016_v9, %v1014_v8  ;;  %v1022_v12 = vld [vmem:[#allocation2 + $0x18] sm:$0xff]  ;;  %v736_v15 = vld [vmem:[#allocation7 + $0x30] sm:$0xff]  ;;  %v735_v16 = vld [vmem:[#allocation7 + $0x28] sm:$0xff] }
  0x1c   :  { %182 = vmatpush.bf16.msra.mxu0 %v728_v1  ;;  %v114_v13 = vpack.c.bf16 %v1022_v12, %v1020_v11  ;;  %v737_v14 = vld [vmem:[#allocation7 + $0x38] sm:$0xff]  ;;  %v1026_v17 = vld [vmem:[#allocation2 + $0x20] sm:$0xff]  ;;  %v1028_v18 = vld [vmem:[#allocation2 + $0x28] sm:$0xff] }
  0x1d   :  { %286 = vmatpush.bf16.msra.mxu1 %v737_v14  ;;  %v734_v19 = vld [vmem:[#allocation7 + $0x20] sm:$0xff]  ;;  %v115_v20 = vpack.c.bf16 %v1028_v18, %v1026_v17  ;;  %v733_v21 = vld [vmem:[#allocation7 + $0x18] sm:$0xff]  ;;  %v1032_v22 = vld [vmem:[#allocation2 + $0x30] sm:$0xff] }
  0x1e   :  { %v1034_v23 = vld [vmem:[#allocation2 + $0x38] sm:$0xff]  ;;  %v732_v25 = vld [vmem:[#allocation7 + $0x10] sm:$0xff]  ;;  %v731_v26 = vld [vmem:[#allocation7 + $0x8] sm:$0xff] }
  0x1f   :  { %v116_v24 = vpack.c.bf16 %v1034_v23, %v1032_v22  ;;  %v730_v27 = vld [vmem:[#allocation7] sm:$0xff]  ;;  %v745_v38 = vld [vmem:[#allocation8 + $0x38] sm:$0xff]  ;;  %v744_v39 = vld [vmem:[#allocation8 + $0x30] sm:$0xff] }
  0x20   :  { %183 = vmatpush.bf16.msra.mxu0 %v727_v2  ;;  %427 = vmatpush.bf16.msra.mxu2 %v745_v38  ;;  %v743_v50 = vld [vmem:[#allocation8 + $0x28] sm:$0xff]  ;;  %v742_v51 = vld [vmem:[#allocation8 + $0x20] sm:$0xff]  ;;  %v741_v52 = vld [vmem:[#allocation8 + $0x18] sm:$0xff] }
  0x21   :  { %287 = vmatpush.bf16.msra.mxu1 %v736_v15  ;;  %v740_v53 = vld [vmem:[#allocation8 + $0x10] sm:$0xff]  ;;  %v739_v54 = vld [vmem:[#allocation8 + $0x8] sm:$0xff]  ;;  %v738_v55 = vld [vmem:[#allocation8] sm:$0xff] }
  0x24   :  { %184 = vmatpush.bf16.msra.mxu0 %v726_v3  ;;  %428 = vmatpush.bf16.msra.mxu2 %v744_v39 }
  0x25   :  { %288 = vmatpush.bf16.msra.mxu1 %v735_v16 }
  0x28   :  { %185 = vmatpush.bf16.msra.mxu0 %v725_v4  ;;  %429 = vmatpush.bf16.msra.mxu2 %v743_v50 }
  0x29   :  { %289 = vmatpush.bf16.msra.mxu1 %v734_v19 }
  0x2c   :  { %186 = vmatpush.bf16.msra.mxu0 %v724_v5  ;;  %430 = vmatpush.bf16.msra.mxu2 %v742_v51 }
  0x2d   :  { %290 = vmatpush.bf16.msra.mxu1 %v733_v21 }
  0x30   :  { %187 = vmatpush.bf16.msra.mxu0 %v723_v6  ;;  %431 = vmatpush.bf16.msra.mxu2 %v741_v52  ;;  %v747_v52 = vld [vmem:[#allocation10 + $0x8] sm:$0xff] }
  0x31   :  { %291 = vmatpush.bf16.msra.mxu1 %v732_v25 }
  0x34   :  { %188 = vmatpush.bf16.msra.mxu0 %v722_v7  ;;  %432 = vmatpush.bf16.msra.mxu2 %v740_v53  ;;  %v746_v53 = vld [vmem:[#allocation10] sm:$0xff] }
  0x35   :  { %292 = vmatpush.bf16.msra.mxu1 %v731_v26 }
  0x37   :  { %189 = vmatmul.bf16.vlgmr.msra.gmra.mxu0 %v113_v10 }
  0x38   :  { %433 = vmatpush.bf16.msra.mxu2 %v739_v54 }
  0x39   :  { %293 = vmatpush.bf16.msra.mxu1 %v730_v27 }
  0x3c   :  { %434 = vmatpush.bf16.msra.mxu2 %v738_v55  ;;  %v764_v55 = vld [vmem:[%s1062_s4] ss:$0 sm:$0xff] }
  0x47   :  { %194 = vmatmul.bf16.gmra.mxu0 %v114_v13 }
  0x57   :  { %199 = vmatmul.bf16.gmra.mxu0 %v115_v20 }
  0x67   :  { %204 = vmatmul.bf16.gmra.mxu0 %v116_v24 }
  0xb4   :  { %v190_v28 = vpop.f32.mrf.mxu0 }
  0xb5   :  { %v210_v30 = vmax.f32 %v190_v28, 0.0  ;;  %v753_v28 = vld [vmem:[#allocation10 + $0x38] sm:$0xff] }
  0xb6   :  { %536 = vmatpush.bf16.msra.mxu3 %v753_v28 }
  0xbc   :  { %v192_v29 = vpop.f32.mrf.mxu0 }
  0xbd   :  { %v211_v31 = vmax.f32 %v192_v29, 0.0 }
  0xbf   :  { %v218_v32 = vpack.c.bf16 %v211_v31, %v210_v30  ;;  %v752_v30 = vld [vmem:[#allocation10 + $0x30] sm:$0xff] }
  0xc0   :  { %537 = vmatpush.bf16.msra.mxu3 %v752_v30 }
  0xc1   :  { %294 = vmatmul.bf16.vlgmr.msra.gmra.mxu1 %v218_v32 }
  0xc4   :  { %v195_v33 = vpop.f32.mrf.mxu0 }
  0xc5   :  { %v212_v35 = vmax.f32 %v195_v33, 0.0  ;;  %v751_v33 = vld [vmem:[#allocation10 + $0x28] sm:$0xff] }
  0xc6   :  { %538 = vmatpush.bf16.msra.mxu3 %v751_v33 }
  0xcc   :  { %v197_v34 = vpop.f32.mrf.mxu0 }
  0xcd   :  { %v213_v36 = vmax.f32 %v197_v34, 0.0 }
  0xcf   :  { %v219_v37 = vpack.c.bf16 %v213_v36, %v212_v35 }
  0xd1   :  { %299 = vmatmul.bf16.gmra.mxu1 %v219_v37 }
  0xd4   :  { %v200_v40 = vpop.f32.mrf.mxu0 }
  0xd5   :  { %v214_v42 = vmax.f32 %v200_v40, 0.0 }
  0xdc   :  { %v202_v41 = vpop.f32.mrf.mxu0 }
  0xdd   :  { %v215_v43 = vmax.f32 %v202_v41, 0.0 }
  0xdf   :  { %v220_v44 = vpack.c.bf16 %v215_v43, %v214_v42 }
  0xe1   :  { %304 = vmatmul.bf16.gmra.mxu1 %v220_v44 }
  0xe4   :  { %v205_v45 = vpop.f32.mrf.mxu0 }
  0xe5   :  { %v216_v47 = vmax.f32 %v205_v45, 0.0 }
  0xec   :  { %v207_v46 = vpop.f32.mrf.mxu0 }
  0xed   :  { %v217_v48 = vmax.f32 %v207_v46, 0.0 }
  0xef   :  { %v221_v49 = vpack.c.bf16 %v217_v48, %v216_v47 }
  0xf1   :  { %309 = vmatmul.bf16.gmra.mxu1 %v221_v49 }
 0x13e   :  { %v295_v56 = vpop.f32.mrf.mxu1 }
 0x13f   :  { %v315_v57 = vmul.f32 0.5, %v295_v56 }
 0x141   :  { %766 = vtanh.f32 %v315_v57 }
 0x146   :  { %v297_v58 = vpop.f32.mrf.mxu1 }
 0x147   :  { %v316_v59 = vmul.f32 0.5, %v297_v58  ;;  %v767_v60 = vpop.eup %766 }
 0x148   :  { %v331_v61 = vmul.f32 0.5, %v767_v60 }
 0x149   :  { %768 = vtanh.f32 %v316_v59 }
 0x14a   :  { %v339_v1 = vadd.f32 0.5, %v331_v61 }
 0x14c   :  { %v347_v4 = vmul.f32 %v339_v1, %v1014_v8 }
 0x14e   :  { %v300_v62 = vpop.f32.mrf.mxu1 }
 0x14f   :  { %v769_v63 = vpop.eup %768  ;;  %v317_v0 = vmul.f32 0.5, %v300_v62 }
 0x150   :  { %v332_v2 = vmul.f32 0.5, %v769_v63 }
 0x151   :  { %770 = vtanh.f32 %v317_v0 }
 0x152   :  { %v340_v3 = vadd.f32 0.5, %v332_v2 }
 0x154   :  { %v348_v5 = vmul.f32 %v340_v3, %v1016_v9 }
 0x156   :  { %v302_v6 = vpop.f32.mrf.mxu1  ;;  %v355_v7 = vpack.c.bf16 %v348_v5, %v347_v4 }
 0x157   :  { %v318_v10 = vmul.f32 0.5, %v302_v6  ;;  %v771_v13 = vpop.eup %770 }
 0x158   :  { %435 = vmatmul.bf16.vlgmr.msra.gmra.mxu2 %v355_v7  ;;  %v333_v14 = vmul.f32 0.5, %v771_v13 }
 0x159   :  { %772 = vtanh.f32 %v318_v10 }
 0x15a   :  { %v341_v20 = vadd.f32 0.5, %v333_v14 }
 0x15c   :  { %v349_v25 = vmul.f32 %v341_v20, %v1020_v11 }
 0x15e   :  { %v305_v15 = vpop.f32.mrf.mxu1 }
 0x15f   :  { %v773_v16 = vpop.eup %772  ;;  %v319_v19 = vmul.f32 0.5, %v305_v15 }
 0x160   :  { %v334_v21 = vmul.f32 0.5, %v773_v16 }
 0x161   :  { %774 = vtanh.f32 %v319_v19 }
 0x162   :  { %v342_v24 = vadd.f32 0.5, %v334_v21 }
 0x164   :  { %v350_v8 = vmul.f32 %v342_v24, %v1022_v12  ;;  %v750_v12 = vld [vmem:[#allocation10 + $0x20] sm:$0xff] }
 0x165   :  { %539 = vmatpush.bf16.msra.mxu3 %v750_v12 }
 0x166   :  { %v307_v26 = vpop.f32.mrf.mxu1  ;;  %v356_v9 = vpack.c.bf16 %v350_v8, %v349_v25  ;;  %v765_v25 = vld [vmem:[%s1064_s6] ss:$0 sm:$0xff]  ;;  %s943_s6 = smov [#allocation11]  }
 0x167   :  { %v320_v27 = vmul.f32 0.5, %v307_v26  ;;  %v775_v29 = vpop.eup %774  ;;  %s577_s28 = sshll.u32 %s943_s6, 4  ;;  %s578_s28 = int_to_ptr.vmem [resolvable:$true] %s577_s28 }
 0x168   :  { %440 = vmatmul.bf16.gmra.mxu2 %v356_v9  ;;  %v335_v31 = vmul.f32 0.5, %v775_v29 }
 0x169   :  { %776 = vtanh.f32 %v320_v27 }
 0x16a   :  { %v343_v36 = vadd.f32 0.5, %v335_v31 }
 0x16c   :  { %v351_v38 = vmul.f32 %v343_v36, %v1026_v17  ;;  %v749_v17 = vld [vmem:[#allocation10 + $0x18] sm:$0xff] }
 0x16d   :  { %540 = vmatpush.bf16.msra.mxu3 %v749_v17 }
 0x16e   :  { %v310_v32 = vpop.f32.mrf.mxu1 }
 0x16f   :  { %v777_v34 = vpop.eup %776  ;;  %v321_v35 = vmul.f32 0.5, %v310_v32 }
 0x170   :  { %v336_v37 = vmul.f32 0.5, %v777_v34 }
 0x171   :  { %778 = vtanh.f32 %v321_v35 }
 0x172   :  { %v344_v11 = vadd.f32 0.5, %v336_v37 }
 0x174   :  { %v352_v39 = vmul.f32 %v344_v11, %v1028_v18  ;;  %v748_v18 = vld [vmem:[#allocation10 + $0x10] sm:$0xff] }
 0x175   :  { %541 = vmatpush.bf16.msra.mxu3 %v748_v18 }
 0x176   :  { %v312_v40 = vpop.f32.mrf.mxu1  ;;  %v357_v41 = vpack.c.bf16 %v352_v39, %v351_v38 }
 0x177   :  { %v322_v42 = vmul.f32 0.5, %v312_v40  ;;  %v779_v43 = vpop.eup %778 }
 0x178   :  { %445 = vmatmul.bf16.gmra.mxu2 %v357_v41  ;;  %v337_v44 = vmul.f32 0.5, %v779_v43 }
 0x179   :  { %780 = vtanh.f32 %v322_v42  ;;  %542 = vmatpush.bf16.msra.mxu3 %v747_v52 }
 0x17a   :  { %v345_v46 = vadd.f32 0.5, %v337_v44 }
 0x17c   :  { %v353_v49 = vmul.f32 %v345_v46, %v1032_v22 }
 0x17d   :  { %543 = vmatpush.bf16.msra.mxu3 %v746_v53 }
 0x17f   :  { %v781_v45 = vpop.eup %780 }
 0x180   :  { %v338_v47 = vmul.f32 0.5, %v781_v45 }
 0x182   :  { %v346_v48 = vadd.f32 0.5, %v338_v47 }
 0x184   :  { %v354_v50 = vmul.f32 %v346_v48, %v1034_v23 }
 0x186   :  { %v358_v51 = vpack.c.bf16 %v354_v50, %v353_v49 }
 0x188   :  { %450 = vmatmul.bf16.gmra.mxu2 %v358_v51 }
 0x1db   :  { %v436_v54 = vpop.f32.mrf.mxu2 }
 0x1dc   :  { %v437_v56 = vadd.f32 %v764_v55, %v436_v54 }
 0x1de   :  { %v456_v58 = vmax.f32 %v437_v56, 0.0 }
 0x1e3   :  { %v438_v57 = vpop.f32.mrf.mxu2 }
 0x1e4   :  { %v439_v22 = vadd.f32 %v764_v55, %v438_v57 }
 0x1e6   :  { %v457_v23 = vmax.f32 %v439_v22, 0.0 }
 0x1e8   :  { %v464_v59 = vpack.c.bf16 %v457_v23, %v456_v58 }
 0x1ea   :  { %544 = vmatmul.bf16.vlgmr.msra.gmra.mxu3 %v464_v59 }
 0x1eb   :  { %v441_v60 = vpop.f32.mrf.mxu2 }
 0x1ec   :  { %v442_v61 = vadd.f32 %v764_v55, %v441_v60 }
 0x1ee   :  { %v458_v0 = vmax.f32 %v442_v61, 0.0 }
 0x1f3   :  { %v443_v62 = vpop.f32.mrf.mxu2 }
 0x1f4   :  { %v444_v63 = vadd.f32 %v764_v55, %v443_v62 }
 0x1f6   :  { %v459_v1 = vmax.f32 %v444_v63, 0.0 }
 0x1f8   :  { %v465_v2 = vpack.c.bf16 %v459_v1, %v458_v0 }
 0x1fa   :  { %549 = vmatmul.bf16.gmra.mxu3 %v465_v2 }
 0x1fb   :  { %v446_v3 = vpop.f32.mrf.mxu2 }
 0x1fc   :  { %v447_v4 = vadd.f32 %v764_v55, %v446_v3 }
 0x1fe   :  { %v460_v7 = vmax.f32 %v447_v4, 0.0 }
 0x203   :  { %v448_v5 = vpop.f32.mrf.mxu2 }
 0x204   :  { %v449_v6 = vadd.f32 %v764_v55, %v448_v5 }
 0x206   :  { %v461_v10 = vmax.f32 %v449_v6, 0.0 }
 0x208   :  { %v466_v13 = vpack.c.bf16 %v461_v10, %v460_v7 }
 0x20a   :  { %554 = vmatmul.bf16.gmra.mxu3 %v466_v13 }
 0x20b   :  { %v451_v14 = vpop.f32.mrf.mxu2 }
 0x20c   :  { %v452_v15 = vadd.f32 %v764_v55, %v451_v14 }
 0x20e   :  { %v462_v20 = vmax.f32 %v452_v15, 0.0 }
 0x213   :  { %v453_v16 = vpop.f32.mrf.mxu2 }
 0x214   :  { %v454_v19 = vadd.f32 %v764_v55, %v453_v16 }
 0x216   :  { %v463_v21 = vmax.f32 %v454_v19, 0.0 }
 0x218   :  { %v467_v24 = vpack.c.bf16 %v463_v21, %v462_v20 }
 0x21a   :  { %559 = vmatmul.bf16.gmra.mxu3 %v467_v24 }
 0x26d   :  { %v545_v8 = vpop.f32.mrf.mxu3 }
 0x26e   :  { %v546_v26 = vadd.f32 %v765_v25, %v545_v8 }
 0x270   :  { %565 = vst [vmem:[#allocation11] sm:$0xff] %v546_v26 }
 0x275   :  { %v547_v9 = vpop.f32.mrf.mxu3 }
 0x276   :  { %v548_v27 = vadd.f32 %v765_v25, %v547_v9 }
 0x278   :  { %566 = vst [vmem:[#allocation11 + $0x8] sm:$0xff] %v548_v27 }
 0x27d   :  { %v550_v28 = vpop.f32.mrf.mxu3 }
 0x27e   :  { %v551_v29 = vadd.f32 %v765_v25, %v550_v28 }
 0x280   :  { %567 = vst [vmem:[#allocation11 + $0x10] sm:$0xff] %v551_v29 }
 0x285   :  { %v552_v30 = vpop.f32.mrf.mxu3 }
 0x286   :  { %v553_v31 = vadd.f32 %v765_v25, %v552_v30 }
 0x288   :  { %568 = vst [vmem:[#allocation11 + $0x18] sm:$0xff] %v553_v31 }
 0x28d   :  { %v555_v32 = vpop.f32.mrf.mxu3 }
 0x28e   :  { %v556_v33 = vadd.f32 %v765_v25, %v555_v32 }
 0x290   :  { %569 = vst [vmem:[#allocation11 + $0x20] sm:$0xff] %v556_v33 }
 0x295   :  { %v557_v34 = vpop.f32.mrf.mxu3 }
 0x296   :  { %v558_v35 = vadd.f32 %v765_v25, %v557_v34 }
 0x298   :  { %570 = vst [vmem:[#allocation11 + $0x28] sm:$0xff] %v558_v35 }
 0x29d   :  { %v560_v36 = vpop.f32.mrf.mxu3 }
 0x29e   :  { %v561_v37 = vadd.f32 %v765_v25, %v560_v36 }
 0x2a0   :  { %571 = vst [vmem:[#allocation11 + $0x30] sm:$0xff] %v561_v37 }
 0x2a5   :  { %v562_v11 = vpop.f32.mrf.mxu3 }
 0x2a6   :  { %v563_v12 = vadd.f32 %v765_v25, %v562_v11 }
 0x2a8   :  { %572 = vst [vmem:[#allocation11 + $0x38] sm:$0xff] %v563_v12 }
 0x2a9   :  { %585 = dma.vmem_to_hbm [thread:$0]  %s578_s28, 1024, %s580_s8, [#allocation4], %s939_s19, %s939_s19, %s940_s20  }
 0x2aa   :  { %932 = dma.done.wait [#allocation4], 1024  }
 0x2ab   :  { %933 = vsyncadd [#allocation4], 4294966272 }
 0x2ac   :  { %590 = vsyncpa [#allocation3], 1 }
 0x2ad   :  { %591 = vsyncpa [#allocation6], 1 }
 0x2ae   :  { %592 = vsyncpa [#allocation9], 1 }
 0x2af   :  { %593 = vsyncpa [#allocation4], 1 }

</bundles_post_ra>
